<compile_context>
chip_gen: v6e
topology: v6e:2x2x1
jax: 0.10.0
libtpu: 0.0.40
codegen_flags: <defaults>
</compile_context>

<pallas_src>
import jax
import jax.numpy as jnp
from jax.experimental import pallas as pl
from jax.experimental.pallas import tpu as pltpu  # noqa: F401  (TPU backend / future tiling)


def _make_classifier_kernel(layer_dims):
    """Build a kernel closed over the (static) per-layer dims.

    Kernel ref order: (x_ref, p0, p1, ..., o_ref)
      p_l: (in_l + 2, out_l) packed  [v_t ; g ; b]
      x:   (B, in_0)     o: (B, out_last)
    """
    n_layers = len(layer_dims)

    def kernel(*refs):
        x_ref = refs[0]
        o_ref = refs[1 + n_layers]

        x = x_ref[...]
        for l, (d_in, d_out) in enumerate(layer_dims):
            p = refs[1 + l][...]                # (in + 2, out) packed param block
            v_t = p[:d_in, :]                   # (in, out)  -- weight_norm 'v', transposed
            g = p[d_in:d_in + 1, :]             # (1, out)
            b = p[d_in + 1:d_in + 2, :]         # (1, out)

            # Per-output-column inverse norm, directly lane-laid as (1, out) (no reshape).
            norm2 = jnp.sum(v_t * v_t, axis=0, keepdims=True)        # (1, out)
            s = g * jax.lax.rsqrt(norm2)                              # EUP rsqrt
            # NOTE: a zero row in v gives rsqrt(0)=inf -> NaN, identical to PyTorch.

            # Canonical (B, K) @ (K, N) contraction -- single clean MXU pass.
            y = jnp.dot(x, v_t, preferred_element_type=jnp.float32)  # (B, out)

            # Scaling output columns by s == normalizing the weight rows.
            x = y * s + b

        o_ref[...] = x

    return kernel


def classifier_forward(x, packed_params, layer_dims):
    """Single fused, grid-less pallas_call over the whole weight-normed Linear stack."""
    B = x.shape[0]
    out_dim = layer_dims[-1][1]

    flat_inputs = [x] + list(packed_params)
    in_specs = [pl.BlockSpec(a.shape, lambda: (0, 0)) for a in flat_inputs]

    return pl.pallas_call(
        _make_classifier_kernel(layer_dims),
        out_shape=jax.ShapeDtypeStruct((B, out_dim), jnp.float32),
        in_specs=in_specs,
        out_specs=pl.BlockSpec((B, out_dim), lambda: (0, 0)),
    )(*flat_inputs)


def make_classifier_params(key, code_dim, class_dim, layers):
    """Deterministic synthetic raw params mirroring Classifier.__init__ shapes.

    Returns list of (v, g, b) with PyTorch layouts: v (out, in), g (out,), b (out,).
    """
    dim_diff = float(class_dim - code_dim) / layers
    params = []
    for lidx in range(layers):
        fc_in = int(code_dim + lidx * dim_diff)
        fc_out = int(code_dim + (lidx + 1) * dim_diff)
        key, k1, k2, k3 = jax.random.split(key, 4)
        v = jax.random.normal(k1, (fc_out, fc_in), dtype=jnp.float32) * 0.1
        g = jax.random.uniform(k2, (fc_out,), dtype=jnp.float32, minval=0.5, maxval=1.5)
        b = jax.random.normal(k3, (fc_out,), dtype=jnp.float32) * 0.01
        params.append((v, g, b))
    return params


def pack_classifier_params(raw_params):
    """Pack each layer's (v, g, b) into one (in+2, out) buffer with v stored transposed."""
    packed, layer_dims = [], []
    for (v, g, b) in raw_params:
        out_dim, in_dim = v.shape
        p = jnp.concatenate([v.T, g[None, :], b[None, :]], axis=0)   # (in+2, out)
        packed.append(p)
        layer_dims.append((in_dim, out_dim))
    return packed, tuple(layer_dims)


def classifier_forward_ref(x, raw_params):
    """Pure-JAX reference: classic weight_norm formulation (materialize W_eff)."""
    for (v, g, b) in raw_params:
        w_eff = g[:, None] * v / jnp.linalg.norm(v, axis=1, keepdims=True)   # (out, in)
        x = x @ w_eff.T + b[None, :]
    return x


if __name__ == "__main__":
    code_dim, class_dim, class_layers = 32, 8, 2   # dims: 32 -> 20 -> 8
    batch = 8

    key = jax.random.PRNGKey(0)
    key, kx = jax.random.split(key)
    x = jax.random.normal(kx, (batch, code_dim), dtype=jnp.float32)

    raw_params = make_classifier_params(key, code_dim, class_dim, class_layers)
    packed_params, layer_dims = pack_classifier_params(raw_params)

    out = classifier_forward(x, packed_params, layer_dims)
    out = jax.block_until_ready(out)

    ref = classifier_forward_ref(x, raw_params)
    assert out.shape == (batch, class_dim), out.shape
    assert jnp.allclose(out, ref, atol=1e-5, rtol=1e-5), "mismatch vs reference"

    print("KERNEL_OK")
</pallas_src>

<mosaic_0001>
module attributes {stable_mosaic.version = 11 : i64} {
  func.func @kernel(%arg0: memref<8x32xf32, #tpu.memory_space<vmem>>, %arg1: memref<34x20xf32, #tpu.memory_space<vmem>>, %arg2: memref<22x8xf32, #tpu.memory_space<vmem>>, %arg3: memref<8x8xf32, #tpu.memory_space<vmem>>) attributes {dimension_semantics = [], scalar_prefetch = 0 : i64, scratch_operands = 0 : i64, tpu.core_type = #tpu.core_type<tc>} {
    %c0 = arith.constant 0 : index
    %c0_0 = arith.constant 0 : index
    %0 = vector.load %arg0[%c0, %c0_0] : memref<8x32xf32, #tpu.memory_space<vmem>>, vector<8x32xf32>
    %c0_1 = arith.constant 0 : index
    %c0_2 = arith.constant 0 : index
    %1 = vector.load %arg1[%c0_1, %c0_2] : memref<34x20xf32, #tpu.memory_space<vmem>>, vector<34x20xf32>
    %2 = vector.extract_strided_slice %1 {offsets = [0, 0], sizes = [32, 20], strides = [1, 1]} : vector<34x20xf32> to vector<32x20xf32>
    %3 = vector.extract_strided_slice %1 {offsets = [32, 0], sizes = [1, 20], strides = [1, 1]} : vector<34x20xf32> to vector<1x20xf32>
    %4 = vector.extract_strided_slice %1 {offsets = [33, 0], sizes = [1, 20], strides = [1, 1]} : vector<34x20xf32> to vector<1x20xf32>
    %5 = arith.mulf %2, %2 : vector<32x20xf32>
    %cst = arith.constant dense<0.000000e+00> : vector<20xf32>
    %6 = vector.multi_reduction <add>, %5, %cst [0] : vector<32x20xf32> to vector<20xf32>
    %7 = vector.shape_cast %6 : vector<20xf32> to vector<1x20xf32>
    %8 = math.rsqrt %7 : vector<1x20xf32>
    %9 = arith.mulf %3, %8 : vector<1x20xf32>
    %cst_3 = arith.constant dense<0.000000e+00> : vector<8x20xf32>
    %10 = tpu.matmul %0, %2, %cst_3 {dimension_numbers = #tpu.dot_dimension_numbers<[1], [0], [0], [1], [0, 0, 1, 1], [], []>} : vector<8x32xf32>, vector<32x20xf32>, vector<8x20xf32> -> vector<8x20xf32>
    %11 = vector.broadcast %9 : vector<1x20xf32> to vector<8x20xf32>
    %12 = arith.mulf %10, %11 : vector<8x20xf32>
    %13 = vector.broadcast %4 : vector<1x20xf32> to vector<8x20xf32>
    %14 = arith.addf %12, %13 : vector<8x20xf32>
    %c0_4 = arith.constant 0 : index
    %c0_5 = arith.constant 0 : index
    %15 = vector.load %arg2[%c0_4, %c0_5] : memref<22x8xf32, #tpu.memory_space<vmem>>, vector<22x8xf32>
    %16 = vector.extract_strided_slice %15 {offsets = [0, 0], sizes = [20, 8], strides = [1, 1]} : vector<22x8xf32> to vector<20x8xf32>
    %17 = vector.extract_strided_slice %15 {offsets = [20, 0], sizes = [1, 8], strides = [1, 1]} : vector<22x8xf32> to vector<1x8xf32>
    %18 = vector.extract_strided_slice %15 {offsets = [21, 0], sizes = [1, 8], strides = [1, 1]} : vector<22x8xf32> to vector<1x8xf32>
    %19 = arith.mulf %16, %16 : vector<20x8xf32>
    %cst_6 = arith.constant dense<0.000000e+00> : vector<8xf32>
    %20 = vector.multi_reduction <add>, %19, %cst_6 [0] : vector<20x8xf32> to vector<8xf32>
    %21 = vector.shape_cast %20 : vector<8xf32> to vector<1x8xf32>
    %22 = math.rsqrt %21 : vector<1x8xf32>
    %23 = arith.mulf %17, %22 : vector<1x8xf32>
    %cst_7 = arith.constant dense<0.000000e+00> : vector<8x8xf32>
    %24 = tpu.matmul %14, %16, %cst_7 {dimension_numbers = #tpu.dot_dimension_numbers<[1], [0], [0], [1], [0, 0, 1, 1], [], []>} : vector<8x20xf32>, vector<20x8xf32>, vector<8x8xf32> -> vector<8x8xf32>
    %25 = vector.broadcast %23 : vector<1x8xf32> to vector<8x8xf32>
    %26 = arith.mulf %24, %25 : vector<8x8xf32>
    %27 = vector.broadcast %18 : vector<1x8xf32> to vector<8x8xf32>
    %28 = arith.addf %26, %27 : vector<8x8xf32>
    %c0_8 = arith.constant 0 : index
    %c0_9 = arith.constant 0 : index
    %29 = vector.load %arg3[%c0_8, %c0_9] : memref<8x8xf32, #tpu.memory_space<vmem>>, vector<8x8xf32>
    tpu.vector_store %arg3[%c0_8, %c0_9], %28 {strides = array<i32>} : memref<8x8xf32, #tpu.memory_space<vmem>>, vector<8x8xf32>,
    return
  }
}

</mosaic_0001>

<bundles_post_ra>
// kernel: tpu_custom_call.1
= control target key start
LH: loop header
LB: loop body
LE: loop exit
PB: predicated region body
PF: predicated region fallthrough
CT: control target
= control target key end

     0   :  { %vm25_vm0 = vcmask 162816   ;;  %v309_v3 = vmov 0.0   ;;  %vm310_vm1 = vmmov 0   ;;  %s370_s0 = inlined_call_operand.vmem [shape: f32[8,32], index: 0, kind: input, shape index: {}]   ;;  %s371_s1 = inlined_call_operand.vmem [shape: f32[34,20], index: 1, kind: input, shape index: {}]   ;;  %s372_s2 = inlined_call_operand.vmem [shape: f32[22,8], index: 2, kind: input, shape index: {}]   ;;  %s373_s3 = inlined_call_operand.hbm [shape: f32[8,8], index: 3, kind: output, shape index: {}]  }
   0x1   :  { %v19_v0 = vld [vmem:[%s371_s1 + $0x18] sm:$0xff]  ;;  %v18_v1 = vld [vmem:[%s371_s1 + $0x10] sm:$0xff]  ;;  %v17_v2 = vld [vmem:[%s371_s1 + $0x8] sm:$0xff]  ;;  %260 = vmatprep.subr.mxu0 %v309_v3  ;;  %268 = vmatprep.mubr.msk.f32.mxu0 %vm310_vm1, %v309_v3 }
   0x2   :  { %v23_v4 = vmul.f32 %v18_v1, %v18_v1  ;;  %v22_v5 = vmul.f32 %v17_v2, %v17_v2  ;;  %v16_v6 = vld [vmem:[%s371_s1] sm:$0xff]  ;;  %v24_v7 = vmul.f32 %v19_v0, %v19_v0  ;;  %261 = vmatpush3.msra.mxu0 %v19_v0  ;;  %271 = vmatprep.subr.mxu1 %v309_v3 }
   0x3   :  { %v21_v8 = vmul.f32 %v16_v6, %v16_v6 }
   0x4   :  { %8 = vsyncpa [#allocation3], 0  ;;  %262 = vmatprep.subr.mxu0 %v309_v3  ;;  %v27_v9 = vsel %vm25_vm0, %v22_v5, 0.0  ;;  %277 = vmatprep.mubr.msk.f32.mxu1 %vm310_vm1, %v309_v3  ;;  %v29_v10 = vsel %vm25_vm0, %v23_v4, 0.0  ;;  %v31_v13 = vsel %vm25_vm0, %v24_v7, 0.0  ;;  %v15_v14 = vld [vmem:[%s370_s0] sm:$0xff]  ;;  %v115_v31 = vlaneseq }
   0x5   :  { %263 = vmatpush3.msra.mxu0 %v18_v1  ;;  %v26_v11 = vsel %vm25_vm0, %v21_v8, 0.0  ;;  %vm41_vm2 = vcmask 261120   ;;  %v127_v17 = vld [vmem:[%s372_s2 + $0x10] sm:$0x3f]  ;;  %vm149_vm3 = vcmask 1043456   ;;  %v126_v18 = vld [vmem:[%s372_s2 + $0x8] sm:$0xff] }
   0x6   :  { %264 = vmatprep.subr.mxu0 %v309_v3  ;;  %v28_v12 = vadd.f32 %v27_v9, %v26_v11  ;;  %272 = vmatpush3.msk.msra.mxu1 %vm149_vm3, %v127_v17  ;;  %v129_v19 = vmul.f32 %v126_v18, %v126_v18  ;;  %v125_v20 = vld [vmem:[%s372_s2] sm:$0xff]  ;;  %vm131_vm4 = vcmask 64512   ;;  %v116_v32 = vshrl.u32 %v115_v31, 7 }
   0x7   :  { %265 = vmatpush3.msra.mxu0 %v17_v2  ;;  %273 = vmatprep.subr.mxu1 %v309_v3  ;;  %v128_v21 = vmul.f32 %v125_v20, %v125_v20  ;;  %v20_v34 = vld [vmem:[%s371_s1 + $0x20] sm:$0x3]  ;;  %v130_v44 = vmul.f32 %v127_v17, %v127_v17  ;;  %vm135_vm5 = vcmask 60416   ;;  %s311_s1 = smov [#allocation2]  }
   0x8   :  { %266 = vmatprep.subr.mxu0 %v309_v3  ;;  %v30_v15 = vadd.f32 %v29_v10, %v28_v12  ;;  %274 = vmatpush3.msra.mxu1 %v126_v18  ;;  %v133_v23 = vsel %vm131_vm4, %v129_v19, 0.0  ;;  %v117_v36 = vsub.s32 0, %v116_v32  ;;  %v122_v37 = vsub.s32 1, %v116_v32  ;;  %s240_s28 = sshll.u32 %s311_s1, 4  ;;  %s241_s28 = int_to_ptr.vmem [resolvable:$true] %s240_s28 }
   0x9   :  { %267 = vmatpush3.msra.mxu0 %v16_v6  ;;  %275 = vmatprep.subr.mxu1 %v309_v3  ;;  %v132_v22 = vsel %vm131_vm4, %v128_v21, 0.0  ;;  %v136_v45 = vsel %vm135_vm5, %v130_v44, 0.0  ;;  %v225_v55 = vsub.s32 4, %v116_v32  ;;  %v230_v56 = vsub.s32 5, %v116_v32  ;;  %s287_s29 = scalar_lea.vmem %s241_s28, 128  ;;  %p292_p1 = scmp.lt.s32.totalorder %s241_s28, %s241_s28 }
   0xa   :  { %v32_v16 = vadd.f32 %v31_v13, %v30_v15  ;;  %269 = vmatmul.mubr.msk.f32.vlgmr.msra.gmra.mxu0 %vm41_vm2, %v15_v14  ;;  %276 = vmatpush3.msra.mxu1 %v125_v20  ;;  %v134_v24 = vadd.f32 %v133_v23, %v132_v22  ;;  %v123_v39 = vrot.slane %v20_v34, %v122_v37  ;;  %p288_p0 = scmp.ne.s32.totalorder %s241_s28, %s287_s29  ;;  %p293_p2 = scmp.lt.s32.totalorder %s287_s29, %s287_s29 }
   0xb   :  { %v231_v58 = vrot.slane %v127_v17, %v230_v56 }
   0xc   :  { %v33_v25 = vrot.slane %v32_v16, 4  ;;  %v137_v46 = vadd.f32 %v136_v45, %v134_v24  ;;  %p294_p3 = por %p293_p2, %p292_p1 }
   0xe   :  { %v34_v26 = vadd.f32 %v33_v25, %v32_v16  ;;  %v138_v47 = vrot.slane %v137_v46, 4  ;;  %p295_p4 = pnand %p294_p3, %p288_p0 }
  0x10   :  { %v35_v27 = vrot.slane %v34_v26, 2  ;;  %v139_v48 = vadd.f32 %v138_v47, %v137_v46 }
  0x12   :  { %v36_v28 = vadd.f32 %v35_v27, %v34_v26  ;;  %v140_v49 = vrot.slane %v139_v48, 2 }
  0x14   :  { %v37_v29 = vrot.slane %v36_v28, 1  ;;  %v141_v50 = vadd.f32 %v140_v49, %v139_v48 }
  0x16   :  { %v38_v30 = vadd.f32 %v37_v29, %v36_v28  ;;  %v142_v51 = vrot.slane %v141_v50, 1 }
  0x18   :  { %283 = vrsqrt.f32 %v38_v30  ;;  %v143_v52 = vadd.f32 %v142_v51, %v141_v50 }
  0x1a   :  { %285 = vrsqrt.f32 %v143_v52 }
  0x25   :  { %v284_v33 = vpop.eup %283 }
  0x26   :  { %v40_v35 = vmul.f32 %v284_v33, %v20_v34 }
  0x27   :  { %v286_v53 = vpop.eup %285 }
  0x28   :  { %v118_v38 = vrot.slane %v40_v35, %v117_v36  ;;  %v145_v54 = vmul.f32 %v286_v53, %v127_v17 }
  0x2a   :  { %v226_v57 = vrot.slane %v145_v54, %v225_v55 }
  0xca   :  { %v111_v40 = vpop.f32.mrf.mxu0 }
  0xcb   :  { %v119_v41 = vmul.f32 %v118_v38, %v111_v40 }
  0xcc   :  { %v270_v42 = vpop.f32.mrf.mxu0 }
  0xcd   :  { %v124_v43 = vadd.f32 %v123_v39, %v119_v41 }
  0xcf   :  { %278 = vmatmul.mubr.msk.f32.vlgmr.msra.gmra.mxu1 %vm25_vm0, %v124_v43 }
 0x18f   :  { %v219_v59 = vpop.f32.mrf.mxu1 }
 0x190   :  { %v227_v60 = vmul.f32 %v226_v57, %v219_v59 }
 0x191   :  { %v279_v61 = vpop.f32.mrf.mxu1 }
 0x192   :  { %v232_v62 = vadd.f32 %v231_v58, %v227_v60 }
 0x194   :  { %233 = vst.msk [vmem:[#allocation2] sm:$0xff] %vm131_vm4, %v232_v62 }
 0x195   :  { %298 = shalt.err (!%p295_p4)
}
 0x196   :  { %243 = dma.vmem_to_hbm [thread:$0]  %s241_s28, 128, %s373_s3, [#allocation3]  }
 0x197   :  { %307 = dma.done.wait [#allocation3], 128  }
 0x198   :  { %308 = vsyncadd [#allocation3], 4294967168 }
 0x199   :  { %247 = vsyncpa [#allocation3], 1 }

</bundles_post_ra>
